<compile_context>
chip_gen: v6e
topology: v6e:2x2x1
jax: 0.10.0
libtpu: 0.0.40
codegen_flags: <defaults>
</compile_context>

<pallas_src>
import jax
import jax.numpy as jnp
from jax import lax
from jax.experimental import pallas as pl
from jax.experimental.pallas import tpu as pltpu

_PAIRWISE_EPS = 1e-6                  # torch F.pairwise_distance default eps
_MIB = 1024 * 1024


def _tpu_params():
    """Best-effort chip query -> (vmem_capacity_bytes, num_tensorcores)."""
    vmem_cap = 0
    cores_attr = 0
    try:
        info = pltpu.get_tpu_info()
        vmem_cap = int(getattr(info, "vmem_capacity_bytes", 0) or 0)
        cores_attr = int(getattr(info, "num_cores", 0) or 0)
    except Exception:
        pass
    detected = vmem_cap > 0
    if not detected:
        vmem_cap = 64 * _MIB          # conservative (small-VMEM) assumption
    if cores_attr > 0:
        cores = cores_attr
    elif detected and vmem_cap <= 64 * _MIB:
        cores = 2                     # 64 MiB/TC chips (v7x) have 2 TensorCores
    else:
        cores = 1                     # v5e / v6e (or unknown): single TensorCore
    return vmem_cap, cores


def _budgets(vmem_cap):
    """(scoped vmem_limit_bytes, input/scratch budget for tile sizing)."""
    if vmem_cap >= 96 * _MIB:         # v5e / v6e: 128 MiB physical VMEM
        return 96 * _MIB, 56 * _MIB
    return 40 * _MIB, 22 * _MIB       # v7x: 64 MiB per TensorCore


def _pick_block_rows(batch, feat, in_isz, lbl_isz, input_budget):
    """Largest row tile whose accounted per-row VMEM fits the input budget."""
    d_pad = ((feat + 127) // 128) * 128          # lane-padded feature width
    per_row = (4 * d_pad * in_isz                # o1, o2 x 2 pipeline buffers
               + 2 * d_pad * 4                   # f32 diff / diff^2 temporaries
               + 2 * 128 * lbl_isz               # lane-padded (tb,1) label x 2 buffers
               + 6 * 512)                        # lane-padded f32 (tb,1) temporaries
    tb = int(input_budget) // per_row
    if tb >= batch:
        return batch                             # single full-batch tile
    if tb >= 256:
        return (tb // 128) * 128                 # layout-friendly for any dtype
    # TODO(synk): for D so large that ~32 rows exceed the scoped VMEM limit,
    # add an in-kernel D-chunked running-sum reduction.
    return max(32, (tb // 32) * 32)


def _make_kernel(batch, block_rows, tiles_per_part):
    def kernel(margin_ref, o1_ref, o2_ref, lbl_ref, out_ref):
        p = pl.program_id(0)      # row partition (core-parallel on 2-TC chips)
        t = pl.program_id(1)      # row tile within the partition (reduction axis)

        @pl.when(t == 0)
        def _init():
            out_ref[...] = jnp.zeros_like(out_ref)

        diff = (o1_ref[...].astype(jnp.float32)
                - o2_ref[...].astype(jnp.float32) + _PAIRWISE_EPS)       # (TB, D)
        d2 = jnp.sum(diff * diff, axis=-1, keepdims=True)               # (TB, 1)
        d = jnp.sqrt(d2)                                                 # EUP path
        lbl = lbl_ref[...].astype(jnp.float32)                           # (TB, 1)
        hinge = jnp.maximum(margin_ref[0] - d, 0.0)
        # (1-l)*d^2 + l*hinge^2, fused to minimise lane-sparse temporaries.
        per_row = d2 + lbl * (hinge * hinge - d2)                        # (TB, 1)

        row0 = (p * tiles_per_part + t) * block_rows
        is_full = row0 + block_rows <= batch

        @pl.when(is_full)
        def _acc_full():
            out_ref[...] += jnp.sum(per_row, axis=0, keepdims=True)

        @pl.when(jnp.logical_not(is_full))
        def _acc_partial():
            # Only remainder / clamped-duplicate tiles pay the iota + mask.
            rows = lax.broadcasted_iota(jnp.int32, (block_rows, 1), 0) + row0
            masked = jnp.where(rows < batch, per_row, 0.0)
            out_ref[...] += jnp.sum(masked, axis=0, keepdims=True)

    return kernel


def contrastive_loss(output1, output2, label, margin=2.0, *, block_rows=None):
    """output1, output2: (B, D); label: (B,) or (B, 1) in any real dtype.

    Returns the scalar float32 contrastive loss.  Pass the label in a narrow
    dtype (bf16 / int8; exact for the 0/1 labels this loss uses) to cut the
    lane-padded label DMA traffic.
    """
    B, D = output1.shape
    lbl2d = jnp.reshape(label, (B, 1))             # keep caller dtype (no f32 upcast)
    margin_arr = jnp.asarray([margin], dtype=jnp.float32)

    vmem_cap, cores = _tpu_params()
    vmem_limit, input_budget = _budgets(vmem_cap)
    in_isz = jnp.dtype(output1.dtype).itemsize
    lbl_isz = jnp.dtype(lbl2d.dtype).itemsize

    tb = (block_rows if block_rows is not None
          else _pick_block_rows(B, D, in_isz, lbl_isz, input_budget))
    tb = min(int(tb), B)
    num_tiles = -(-B // tb)

    def run(nparts, tiles_per_part, dims):
        def row_map(p, t):
            # Clamp so a partition whose tile range overruns num_tiles re-loads
            # the last valid tile; the in-kernel mask zeroes its contribution.
            tile = jnp.minimum(p * tiles_per_part + t, num_tiles - 1)
            return (tile, 0)

        return pl.pallas_call(
            _make_kernel(B, tb, tiles_per_part),
            out_shape=jax.ShapeDtypeStruct((nparts, 8, 128), jnp.float32),
            grid_spec=pltpu.PrefetchScalarGridSpec(
                num_scalar_prefetch=0,
                grid=(nparts, tiles_per_part),
                in_specs=[
                    pl.BlockSpec(memory_space=pltpu.MemorySpace.SMEM),   # margin
                    pl.BlockSpec((tb, D), row_map),                      # output1 rows
                    pl.BlockSpec((tb, D), row_map),                      # output2 rows
                    pl.BlockSpec((tb, 1), row_map),                      # label rows
                ],
                out_specs=pl.BlockSpec((None, 8, 128), lambda p, t: (p, 0, 0)),
            ),
            compiler_params=pltpu.CompilerParams(
                dimension_semantics=dims,
                vmem_limit_bytes=vmem_limit,
            ),
        )(margin_arr, output1, output2, lbl2d)

    arbitrary = getattr(pltpu, "ARBITRARY", "arbitrary")
    core_parallel = getattr(pltpu, "CORE_PARALLEL", None)

    partials = None
    if cores >= 2 and num_tiles >= 2 and core_parallel is not None:
        nparts = 2
        tpp = -(-num_tiles // nparts)
        try:
            partials = run(nparts, tpp, (core_parallel, arbitrary))
        except Exception:
            partials = None            # fall back to the safe single-core path
    if partials is None:
        partials = run(1, num_tiles, (arbitrary, arbitrary))

    # Every lane of a partition's (8,128) block holds that partition's partial
    # sum; reduce the partitions and take the batch mean.
    return jnp.sum(partials[:, 0, 0]) / jnp.float32(B)


if __name__ == "__main__":
    key = jax.random.PRNGKey(0)
    k1, k2, k3, k4, k5 = jax.random.split(key, 5)
    margin = 2.0

    def reference(o1, o2, lbl):
        diff = o1 - o2 + _PAIRWISE_EPS
        d = jnp.sqrt(jnp.sum(diff * diff, axis=-1))
        return jnp.mean((1.0 - lbl) * d ** 2
                        + lbl * jnp.maximum(margin - d, 0.0) ** 2)

    # Case 1: tiny batch -> single full-batch tile.
    B1, D1 = 12, 32
    o1 = jax.random.normal(k1, (B1, D1), dtype=jnp.float32)
    o2 = jax.random.normal(k2, (B1, D1), dtype=jnp.float32)
    lbl1 = jax.random.bernoulli(k3, p=0.5, shape=(B1,))
    loss1 = contrastive_loss(o1, o2, lbl1.astype(jnp.bfloat16), margin=margin)
    jax.block_until_ready(loss1)
    ref1 = reference(o1, o2, lbl1.astype(jnp.float32))
    assert jnp.allclose(loss1, ref1, rtol=1e-5, atol=1e-5), (loss1, ref1)

    # Case 2: forced small row tile -> exercises multi-tile accumulation, the
    # remainder-row mask, and (on multi-core chips) the core-parallel split.
    B2, D2 = 300, 32
    o1b = jax.random.normal(k4, (B2, D2), dtype=jnp.float32)
    o2b = jax.random.normal(k5, (B2, D2), dtype=jnp.float32)
    lbl2 = jax.random.bernoulli(k3, p=0.5, shape=(B2,))
    loss2 = contrastive_loss(o1b, o2b, lbl2.astype(jnp.bfloat16),
                             margin=margin, block_rows=128)
    jax.block_until_ready(loss2)
    ref2 = reference(o1b, o2b, lbl2.astype(jnp.float32))
    assert jnp.allclose(loss2, ref2, rtol=1e-5, atol=1e-5), (loss2, ref2)

    print("KERNEL_OK")
</pallas_src>

<mosaic_0001>
module attributes {stable_mosaic.version = 11 : i64} {
  func.func @kernel(%arg0: i32, %arg1: i32, %arg2: memref<1xf32, #tpu.memory_space<smem>>, %arg3: memref<12x32xf32, #tpu.memory_space<vmem>>, %arg4: memref<12x32xf32, #tpu.memory_space<vmem>>, %arg5: memref<12x1xbf16, #tpu.memory_space<vmem>>, %arg6: memref<1x8x128xf32, #tpu.memory_space<vmem>>) attributes {dimension_semantics = [#tpu.dimension_semantics<arbitrary>, #tpu.dimension_semantics<arbitrary>], iteration_bounds = array<i64: 1, 1>, scalar_prefetch = 0 : i64, scratch_operands = 0 : i64, tpu.core_type = #tpu.core_type<tc>, window_params = [{transform_indices = @transform_0, window_bounds = array<i64: 1>}, {transform_indices = @transform_1, window_bounds = array<i64: 12, 32>}, {transform_indices = @transform_2, window_bounds = array<i64: 12, 32>}, {transform_indices = @transform_3, window_bounds = array<i64: 12, 1>}, {transform_indices = @transform_4, window_bounds = array<i64: 1, 8, 128>}]} {
    %c0_i32 = arith.constant 0 : i32
    %0 = arith.cmpi eq, %arg1, %c0_i32 : i32
    %1 = arith.extui %0 : i1 to i32
    %c0_i32_0 = arith.constant 0 : i32
    %2 = arith.cmpi ne, %1, %c0_i32_0 : i32
    scf.if %2 {
      %cst_13 = arith.constant 0.000000e+00 : f32
      %33 = vector.broadcast %cst_13 : f32 to vector<8x128xf32>
      %c0_14 = arith.constant 0 : index
      %c0_15 = arith.constant 0 : index
      %c0_16 = arith.constant 0 : index
      %34 = vector.load %arg6[%c0_14, %c0_15, %c0_16] : memref<1x8x128xf32, #tpu.memory_space<vmem>>, vector<1x8x128xf32>
      %35 = vector.shape_cast %34 : vector<1x8x128xf32> to vector<8x128xf32>
      %36 = vector.shape_cast %33 : vector<8x128xf32> to vector<1x8x128xf32>
      tpu.vector_store %arg6[%c0_14, %c0_15, %c0_16], %36 {strides = array<i32>} : memref<1x8x128xf32, #tpu.memory_space<vmem>>, vector<1x8x128xf32>,
    } else {
    }
    %c0 = arith.constant 0 : index
    %c0_1 = arith.constant 0 : index
    %3 = vector.load %arg3[%c0, %c0_1] : memref<12x32xf32, #tpu.memory_space<vmem>>, vector<12x32xf32>
    %c0_2 = arith.constant 0 : index
    %c0_3 = arith.constant 0 : index
    %4 = vector.load %arg4[%c0_2, %c0_3] : memref<12x32xf32, #tpu.memory_space<vmem>>, vector<12x32xf32>
    %5 = arith.subf %3, %4 : vector<12x32xf32>
    %cst = arith.constant 9.99999997E-7 : f32
    %6 = vector.broadcast %cst : f32 to vector<12x32xf32>
    %7 = arith.addf %5, %6 : vector<12x32xf32>
    %8 = arith.mulf %7, %7 : vector<12x32xf32>
    %cst_4 = arith.constant dense<0.000000e+00> : vector<12xf32>
    %9 = vector.multi_reduction <add>, %8, %cst_4 [1] : vector<12x32xf32> to vector<12xf32>
    %10 = vector.shape_cast %9 : vector<12xf32> to vector<12x1xf32>
    %11 = math.sqrt %10 : vector<12x1xf32>
    %c0_5 = arith.constant 0 : index
    %c0_6 = arith.constant 0 : index
    %12 = vector.load %arg5[%c0_5, %c0_6] : memref<12x1xbf16, #tpu.memory_space<vmem>>, vector<12x1xbf16>
    %13 = arith.extf %12 : vector<12x1xbf16> to vector<12x1xf32>
    %c0_7 = arith.constant 0 : index
    %14 = memref.load %arg2[%c0_7] : memref<1xf32, #tpu.memory_space<smem>>
    %15 = vector.broadcast %14 : f32 to vector<12x1xf32>
    %16 = arith.subf %15, %11 : vector<12x1xf32>
    %cst_8 = arith.constant 0.000000e+00 : f32
    %17 = vector.broadcast %cst_8 : f32 to vector<12x1xf32>
    %18 = arith.maximumf %16, %17 : vector<12x1xf32>
    %19 = arith.mulf %18, %18 : vector<12x1xf32>
    %20 = arith.subf %19, %10 : vector<12x1xf32>
    %21 = arith.mulf %13, %20 : vector<12x1xf32>
    %22 = arith.addf %10, %21 : vector<12x1xf32>
    %c1_i32 = arith.constant 1 : i32
    %23 = arith.muli %arg0, %c1_i32 : i32
    %24 = arith.addi %23, %arg1 : i32
    %c12_i32 = arith.constant 12 : i32
    %25 = arith.muli %24, %c12_i32 : i32
    %c12_i32_9 = arith.constant 12 : i32
    %26 = arith.addi %25, %c12_i32_9 : i32
    %c12_i32_10 = arith.constant 12 : i32
    %27 = arith.cmpi sle, %26, %c12_i32_10 : i32
    %28 = arith.extui %27 : i1 to i32
    %c0_i32_11 = arith.constant 0 : i32
    %29 = arith.cmpi ne, %28, %c0_i32_11 : i32
    scf.if %29 {
      %c0_13 = arith.constant 0 : index
      %c0_14 = arith.constant 0 : index
      %c0_15 = arith.constant 0 : index
      %33 = vector.load %arg6[%c0_13, %c0_14, %c0_15] : memref<1x8x128xf32, #tpu.memory_space<vmem>>, vector<1x8x128xf32>
      %34 = vector.shape_cast %33 : vector<1x8x128xf32> to vector<8x128xf32>
      %cst_16 = arith.constant dense<0.000000e+00> : vector<1xf32>
      %35 = vector.multi_reduction <add>, %22, %cst_16 [0] : vector<12x1xf32> to vector<1xf32>
      %36 = vector.shape_cast %35 : vector<1xf32> to vector<1x1xf32>
      %37 = vector.broadcast %36 : vector<1x1xf32> to vector<8x128xf32>
      %38 = arith.addf %34, %37 : vector<8x128xf32>
      %c0_17 = arith.constant 0 : index
      %c0_18 = arith.constant 0 : index
      %c0_19 = arith.constant 0 : index
      %39 = vector.load %arg6[%c0_17, %c0_18, %c0_19] : memref<1x8x128xf32, #tpu.memory_space<vmem>>, vector<1x8x128xf32>
      %40 = vector.shape_cast %39 : vector<1x8x128xf32> to vector<8x128xf32>
      %41 = vector.shape_cast %38 : vector<8x128xf32> to vector<1x8x128xf32>
      tpu.vector_store %arg6[%c0_17, %c0_18, %c0_19], %41 {strides = array<i32>} : memref<1x8x128xf32, #tpu.memory_space<vmem>>, vector<1x8x128xf32>,
    } else {
    }
    %true = arith.constant true
    %30 = arith.xori %27, %true : i1
    %31 = arith.extui %30 : i1 to i32
    %c0_i32_12 = arith.constant 0 : i32
    %32 = arith.cmpi ne, %31, %c0_i32_12 : i32
    scf.if %32 {
      %33 = tpu.iota {dimensions = array<i32: 0>} : vector<12x1xi32>
      %34 = vector.broadcast %25 : i32 to vector<12x1xi32>
      %35 = arith.addi %33, %34 : vector<12x1xi32>
      %c12_i32_13 = arith.constant 12 : i32
      %36 = vector.broadcast %c12_i32_13 : i32 to vector<12x1xi32>
      %37 = arith.cmpi slt, %35, %36 : vector<12x1xi32>
      %cst_14 = arith.constant 0.000000e+00 : f32
      %38 = vector.broadcast %cst_14 : f32 to vector<12x1xf32>
      %39 = arith.select %37, %22, %38 : vector<12x1xi1>, vector<12x1xf32>
      %c0_15 = arith.constant 0 : index
      %c0_16 = arith.constant 0 : index
      %c0_17 = arith.constant 0 : index
      %40 = vector.load %arg6[%c0_15, %c0_16, %c0_17] : memref<1x8x128xf32, #tpu.memory_space<vmem>>, vector<1x8x128xf32>
      %41 = vector.shape_cast %40 : vector<1x8x128xf32> to vector<8x128xf32>
      %cst_18 = arith.constant dense<0.000000e+00> : vector<1xf32>
      %42 = vector.multi_reduction <add>, %39, %cst_18 [0] : vector<12x1xf32> to vector<1xf32>
      %43 = vector.shape_cast %42 : vector<1xf32> to vector<1x1xf32>
      %44 = vector.broadcast %43 : vector<1x1xf32> to vector<8x128xf32>
      %45 = arith.addf %41, %44 : vector<8x128xf32>
      %c0_19 = arith.constant 0 : index
      %c0_20 = arith.constant 0 : index
      %c0_21 = arith.constant 0 : index
      %46 = vector.load %arg6[%c0_19, %c0_20, %c0_21] : memref<1x8x128xf32, #tpu.memory_space<vmem>>, vector<1x8x128xf32>
      %47 = vector.shape_cast %46 : vector<1x8x128xf32> to vector<8x128xf32>
      %48 = vector.shape_cast %45 : vector<8x128xf32> to vector<1x8x128xf32>
      tpu.vector_store %arg6[%c0_19, %c0_20, %c0_21], %48 {strides = array<i32>} : memref<1x8x128xf32, #tpu.memory_space<vmem>>, vector<1x8x128xf32>,
    } else {
    }
    return
  }
  func.func @transform_0(%arg0: i32, %arg1: i32) -> i32 {
    %c0_i32 = arith.constant 0 : i32
    %c0_i32_0 = arith.constant 0 : i32
    return %c0_i32 : i32
  }
  func.func @transform_1(%arg0: i32, %arg1: i32) -> (i32, i32) {
    %c1_i32 = arith.constant 1 : i32
    %0 = arith.muli %arg0, %c1_i32 : i32
    %1 = arith.addi %0, %arg1 : i32
    %c0_i32 = arith.constant 0 : i32
    %2 = arith.minsi %1, %c0_i32 : i32
    %c0_i32_0 = arith.constant 0 : i32
    %c0_i32_1 = arith.constant 0 : i32
    return %2, %c0_i32_0 : i32, i32
  }
  func.func @transform_2(%arg0: i32, %arg1: i32) -> (i32, i32) {
    %c1_i32 = arith.constant 1 : i32
    %0 = arith.muli %arg0, %c1_i32 : i32
    %1 = arith.addi %0, %arg1 : i32
    %c0_i32 = arith.constant 0 : i32
    %2 = arith.minsi %1, %c0_i32 : i32
    %c0_i32_0 = arith.constant 0 : i32
    %c0_i32_1 = arith.constant 0 : i32
    return %2, %c0_i32_0 : i32, i32
  }
  func.func @transform_3(%arg0: i32, %arg1: i32) -> (i32, i32) {
    %c1_i32 = arith.constant 1 : i32
    %0 = arith.muli %arg0, %c1_i32 : i32
    %1 = arith.addi %0, %arg1 : i32
    %c0_i32 = arith.constant 0 : i32
    %2 = arith.minsi %1, %c0_i32 : i32
    %c0_i32_0 = arith.constant 0 : i32
    %c0_i32_1 = arith.constant 0 : i32
    return %2, %c0_i32_0 : i32, i32
  }
  func.func @transform_4(%arg0: i32, %arg1: i32) -> (i32, i32, i32) {
    %c0_i32 = arith.constant 0 : i32
    %c0_i32_0 = arith.constant 0 : i32
    %c0_i32_1 = arith.constant 0 : i32
    return %arg0, %c0_i32, %c0_i32_0 : i32, i32, i32
  }
}

</mosaic_0001>

<bundles_post_ra>
// kernel: tpu_custom_call.1
= control target key start
LH: loop header
LB: loop body
LE: loop exit
PB: predicated region body
PF: predicated region fallthrough
CT: control target
= control target key end

     0   :  { %10 = vsyncpa [#allocation4], 0  ;;  %s367_s0 = inlined_call_operand.<no memory space> [shape: f32[1], index: 0, kind: input, shape index: {}]   ;;  %s368_s1 = inlined_call_operand.hbm [shape: f32[12,32], index: 1, kind: input, shape index: {}]   ;;  %s369_s2 = inlined_call_operand.hbm [shape: f32[12,32], index: 2, kind: input, shape index: {}]   ;;  %s370_s3 = inlined_call_operand.vmem [shape: bf16[12,1], index: 3, kind: input, shape index: {}]   ;;  %s371_s4 = inlined_call_operand.hbm [shape: f32[1,8,128], index: 4, kind: output, shape index: {}]  }
   0x1   :  { %11 = vsyncpa [#allocation7], 0 }
   0x2   :  { %12 = vsyncpa [#allocation5], 0  ;;  %s318_s15 = smov [#allocation3]  }
   0x3   :  { %s26_s16 = sshll.u32 %s318_s15, 4  ;;  %s27_s16 = int_to_ptr.vmem [resolvable:$true] %s26_s16 }
   0x4   :  { %s260_s17 = scalar_lea.vmem %s27_s16, 256  ;;  %p265_p1 = scmp.lt.s32.totalorder %s27_s16, %s27_s16 }
   0x5   :  { %p261_p0 = scmp.ne.s32.totalorder %s27_s16, %s260_s17  ;;  %p266_p2 = scmp.lt.s32.totalorder %s260_s17, %s260_s17 }
   0x7   :  { %p267_p3 = por %p266_p2, %p265_p1 }
   0x9   :  { %p268_p4 = pnand %p267_p3, %p261_p0 }
   0xb   :  { %271 = shalt.err (!%p268_p4)
}
   0xc   :  { %s319_s18 = smov 128   ;;  %s320_s19 = smov 8  }
   0xd   :  { %32 = dma.hbm_to_vmem [thread:$0]  %s368_s1, 256, %s27_s16, [#allocation4], %s319_s18, %s319_s18, %s320_s19  }
   0xe   :  { %s321_s22 = smov [#allocation6]  }
   0xf   :  { %s44_s23 = sshll.u32 %s321_s22, 4  ;;  %s45_s23 = int_to_ptr.vmem [resolvable:$true] %s44_s23 }
  0x10   :  { %s280_s24 = scalar_lea.vmem %s45_s23, 256  ;;  %p285_p6 = scmp.lt.s32.totalorder %s45_s23, %s45_s23 }
  0x11   :  { %p281_p5 = scmp.ne.s32.totalorder %s45_s23, %s280_s24  ;;  %p286_p7 = scmp.lt.s32.totalorder %s280_s24, %s280_s24 }
  0x13   :  { %p287_p8 = por %p286_p7, %p285_p6 }
  0x15   :  { %p288_p9 = pnand %p287_p8, %p281_p5 }
  0x17   :  { %291 = shalt.err (!%p288_p9)
}
  0x18   :  { %50 = dma.hbm_to_vmem [thread:$0]  %s369_s2, 256, %s45_s23, [#allocation7], %s319_s18, %s319_s18, %s320_s19  }
  0x19   :  { %312 = dma.done.wait [#allocation4], 256  }
  0x1a   :  { %313 = vsyncadd [#allocation4], 4294967040 }
  0x1b   :  { %314 = dma.done.wait [#allocation7], 256  }
  0x1c   :  { %315 = vsyncadd [#allocation7], 4294967040  ;;  %v104_v0 = vld [vmem:[#allocation3] sm:$0xff]  ;;  %v106_v1 = vld [vmem:[#allocation6] sm:$0xff]  ;;  %vm114_vm0 = vcmask 261120   ;;  %vm118_vm1 = vcmask 257024   ;;  %v141_v18 = vstv %s367_s0 }
  0x1d   :  { %v105_v2 = vld [vmem:[#allocation3 + $0x8] sm:$0xf]  ;;  %v108_v3 = vsub.f32 %v104_v0, %v106_v1  ;;  %v107_v4 = vld [vmem:[#allocation6 + $0x8] sm:$0xf]  ;;  %v322_v12 = vmov 0   ;;  %vm162_vm6 = vcmask 7168  }
  0x1e   :  { %v109_v5 = vsub.f32 %v105_v2, %v107_v4  ;;  %246 = vset.pattern.permute.xlu1 %v322_v12  ;;  %247 = vset.pattern.permute.xlu0 %v322_v12  ;;  %v136_v25 = vld [vmem:[%s370_s3] sm:$0xf]  ;;  %v137_v32 = vld [vmem:[%s370_s3 + $0x4] sm:$0x3]  ;;  %vm164_vm7 = vcmask 3072   ;;  %s323_s3 = smov [#allocation8]  }
  0x1f   :  { %v110_v6 = vadd.f32 1e-06, %v108_v3  ;;  %v138_v29 = vunpack.c.l.bf16 %v136_v25  ;;  %v139_v35 = vunpack.c.l.bf16 %v137_v32  ;;  %s219_s30 = sshll.u32 %s323_s3, 4  ;;  %s220_s30 = int_to_ptr.vmem [resolvable:$true] %s219_s30 }
  0x20   :  { %v111_v7 = vadd.f32 1e-06, %v109_v5  ;;  %s292_s5 = scalar_lea.vmem %s220_s30, 128  ;;  %p297_p11 = scmp.lt.s32.totalorder %s220_s30, %s220_s30 }
  0x21   :  { %v112_v8 = vmul.f32 %v110_v6, %v110_v6  ;;  %p293_p10 = scmp.ne.s32.totalorder %s220_s30, %s292_s5  ;;  %p298_p12 = scmp.lt.s32.totalorder %s292_s5, %s292_s5 }
  0x22   :  { %v113_v9 = vmul.f32 %v111_v7, %v111_v7 }
  0x23   :  { %v115_v10 = vsel %vm114_vm0, %v112_v8, 0.0  ;;  %p299_p13 = por %p298_p12, %p297_p11 }
  0x24   :  { %116 = vadd.xlane.f32.xlu0 %v115_v10  ;;  %v119_v11 = vsel %vm118_vm1, %v113_v9, 0.0 }
  0x25   :  { %p300_p0 = pnand %p299_p13, %p293_p10 }
  0x28   :  { %120 = vadd.xlane.f32.xlu0 %v119_v11 }
  0xad   :  { %v117_v13 = vpop.xlane.xlu0 %116 }
  0xae   :  { %248 = vrsqrt.f32 %v117_v13  ;;  %vm124_vm2 = vcmp.eq.f32.partialorder %v117_v13, inf  ;;  %v127_v17 = vand.u32 2147483648, %v117_v13  ;;  %vm126_vm3 = vcmp.eq.f32.partialorder %v117_v13, 0.0 }
  0xb1   :  { %v121_v14 = vpop.xlane.xlu0 %120 }
  0xb2   :  { %250 = vrsqrt.f32 %v121_v14  ;;  %vm131_vm4 = vcmp.eq.f32.partialorder %v121_v14, inf  ;;  %v134_v24 = vand.u32 2147483648, %v121_v14  ;;  %vm133_vm5 = vcmp.eq.f32.partialorder %v121_v14, 0.0 }
  0xbb   :  { %v249_v15 = vpop.eup %248 }
  0xbc   :  { %v123_v16 = vmul.f32 %v249_v15, %v117_v13 }
  0xbe   :  { %v125_v19 = vsel %vm124_vm2, %v117_v13, %v123_v16 }
  0xbf   :  { %v251_v20 = vpop.eup %250  ;;  %v128_v21 = vsel %vm126_vm3, %v127_v17, %v125_v19 }
  0xc0   :  { %v130_v22 = vmul.f32 %v251_v20, %v121_v14  ;;  %v142_v23 = vsub.f32 %v141_v18, %v128_v21 }
  0xc2   :  { %v132_v26 = vsel %vm131_vm4, %v121_v14, %v130_v22  ;;  %v144_v27 = vmax.f32 %v142_v23, 0.0 }
  0xc3   :  { %v135_v28 = vsel %vm133_vm5, %v134_v24, %v132_v26 }
  0xc4   :  { %v143_v30 = vsub.f32 %v141_v18, %v135_v28  ;;  %v146_v31 = vmul.f32 %v144_v27, %v144_v27 }
  0xc6   :  { %v145_v33 = vmax.f32 %v143_v30, 0.0  ;;  %v148_v34 = vsub.f32 %v146_v31, %v117_v13 }
  0xc8   :  { %v147_v36 = vmul.f32 %v145_v33, %v145_v33  ;;  %v150_v37 = vmul.f32 %v148_v34, %v138_v29 }
  0xca   :  { %v149_v38 = vsub.f32 %v147_v36, %v121_v14  ;;  %v152_v40 = vadd.f32 %v150_v37, %v117_v13 }
  0xcc   :  { %v151_v39 = vmul.f32 %v149_v38, %v139_v35  ;;  %v163_v42 = vsel %vm162_vm6, %v152_v40, 0.0 }
  0xce   :  { %v153_v41 = vadd.f32 %v151_v39, %v121_v14 }
  0xd0   :  { %v165_v43 = vsel %vm164_vm7, %v153_v41, 0.0 }
  0xd1   :  { %v166_v44 = vadd.f32 %v165_v43, %v163_v42 }
  0xd3   :  { %v167_v45 = vrot.slane %v166_v44, 4 }
  0xd5   :  { %v168_v46 = vadd.f32 %v167_v45, %v166_v44 }
  0xd7   :  { %v169_v47 = vrot.slane %v168_v46, 2 }
  0xd9   :  { %v170_v48 = vadd.f32 %v169_v47, %v168_v46 }
  0xdb   :  { %v171_v49 = vrot.slane %v170_v48, 1 }
  0xdd   :  { %v172_v50 = vadd.f32 %v171_v49, %v170_v48 }
  0xdf   :  { %175 = vperm.xlu1 %246, %v172_v50  }
 0x15a   :  { %v176_v51 = vpop.permute.xlu1 %175 }
 0x15b   :  { %179 = vst [vmem:[#allocation8] sm:$0xff] %v176_v51 }
 0x15c   :  { %303 = shalt.err (!%p300_p0)
}
 0x15d   :  { %222 = dma.vmem_to_hbm [thread:$0]  %s220_s30, 128, %s371_s4, [#allocation5]  }
 0x15e   :  { %316 = dma.done.wait [#allocation5], 128  }
 0x15f   :  { %317 = vsyncadd [#allocation5], 4294967168 }
 0x160   :  { %226 = vsyncpa [#allocation4], 1 }
 0x161   :  { %227 = vsyncpa [#allocation7], 1 }
 0x162   :  { %228 = vsyncpa [#allocation5], 1 }

</bundles_post_ra>
